<compile_context>
chip_gen: v7x
topology: tpu7x:2x2x1
jax: 0.10.0
libtpu: 0.0.40
codegen_flags: <defaults>
</compile_context>

<pallas_src>
import math
import jax
import jax.numpy as jnp
from jax import lax
from jax.experimental import pallas as pl
from jax.experimental.pallas import tpu as pltpu

_VMEM_LIMIT = 48 * 1024 * 1024  # > v5e's 16 MiB default, < v7x's 64 MiB physical


def _round_up(x, m):
    return ((x + m - 1) // m) * m


def _pick_tile(dim, target, align):
    """Largest tile <= target that is a multiple of `align` and divides `dim`;
    falls back to the full dim (always legal for a BlockSpec)."""
    if dim <= target:
        return dim
    t = (min(target, dim) // align) * align
    while t >= align:
        if dim % t == 0:
            return t
        t -= align
    return dim


def _pick_row_tile(n, target):
    """Row tile for bf16 LHS: prefer 16-aligned (two rows per sublane), then 8."""
    t = _pick_tile(n, target, 16)
    if t == n and n > target:
        t = _pick_tile(n, target, 8)
    return t


def _pick_batch_tile(b_pad):
    """Batch tile for the recurrence: >=2 tiles when possible so the "parallel"
    grid axis can shard across v7x's two TensorCores; capped at 256 rows to
    fill the 256-wide MXU on v6e/v7x."""
    if b_pad < 32:
        return b_pad
    target = min(256, b_pad // 2)
    t = _pick_tile(b_pad, target, 16)
    if t == b_pad:
        t = _pick_tile(b_pad, target, 8)
    return t


def _pick_time_chunk(t_full, b_tile, h4, *, budget_bytes=4 << 20):
    """Largest divisor of t_full whose bf16 preact chunk fits the byte budget,
    so the double-buffered (in + out) streams stay a few MiB even at H=512+."""
    per_step = b_tile * h4 * 2  # bf16 preactivation bytes per timestep
    target = max(1, budget_bytes // max(per_step, 1))
    if target >= t_full:
        return t_full
    best = 1
    for d in range(1, t_full + 1):
        if t_full % d == 0 and d <= target:
            best = d
    return best


# ----------------------------------------------------------------------------
# Tiled matmul + bias kernel:  (N, K) @ (K, M) + (1, M)  ->  (N, M)
# Used for (a) the hoisted input projection (bf16 out) and (b) the final
# Linear on packed rows (f32 out).  K stays resident; N, M tiled, both
# "parallel" (megacore-friendly).
# ----------------------------------------------------------------------------
def _matmul_bias_kernel(x_ref, w_ref, b_ref, o_ref):
    o_ref[...] = (jnp.dot(x_ref[...], w_ref[...],
                          preferred_element_type=jnp.float32)
                  + b_ref[...]).astype(o_ref.dtype)


def matmul_bias(x, w, b, *, out_dtype=jnp.float32, tm_target=256, tn_target=512):
    """x: (N, K) bf16, w: (K, M) bf16, b: (1, M) f32 -> (N, M) out_dtype."""
    n, k = x.shape
    _, m = w.shape
    tm = _pick_row_tile(n, tm_target)
    tn = _pick_tile(m, tn_target, 128)   # tn_target is 256-aligned for v6e/v7x MXU
    return pl.pallas_call(
        _matmul_bias_kernel,
        out_shape=jax.ShapeDtypeStruct((n, m), out_dtype),
        grid_spec=pltpu.PrefetchScalarGridSpec(
            num_scalar_prefetch=0,
            grid=(n // tm, m // tn),
            in_specs=[
                pl.BlockSpec((tm, k), lambda i, j: (i, 0)),
                pl.BlockSpec((k, tn), lambda i, j: (0, j)),
                pl.BlockSpec((1, tn), lambda i, j: (0, j)),
            ],
            out_specs=pl.BlockSpec((tm, tn), lambda i, j: (i, j)),
        ),
        compiler_params=pltpu.CompilerParams(
            dimension_semantics=("parallel", "parallel"),
            vmem_limit_bytes=_VMEM_LIMIT),
    )(x, w, b)


# ----------------------------------------------------------------------------
# LSTM recurrence kernel, time-chunk streamed.
#   grid = (batch_tiles [parallel], time_chunks [arbitrary])
#   preact_ref : (T_chunk, b_tile, 4*H_pad) bf16   (X @ W_ih + b, precomputed)
#   whh_ref    : (H_pad, 4*H_pad) bf16             (grid-invariant)
#   out_ref    : (T_chunk, b_tile, H_pad) bf16     (hidden states)
#   h_s, c_s   : (b_tile, H_pad) f32 scratch, persist across time chunks
# ----------------------------------------------------------------------------
def _lstm_recurrence_kernel(preact_ref, whh_ref, out_ref, h_s, c_s):
    t_chunk, _, h4 = preact_ref.shape
    h_pad = h4 // 4

    @pl.when(pl.program_id(1) == 0)  # first time chunk of this batch tile
    def _():
        h_s[...] = jnp.zeros_like(h_s)
        c_s[...] = jnp.zeros_like(c_s)

    def _sigmoid(x):
        # One EUP push per gate instead of exp+divide.
        return 0.5 * jnp.tanh(0.5 * x) + 0.5

    def step(t, _):
        # Only h_prev @ W_hh sits on the serial chain (one fused bf16 MXU push).
        z = preact_ref[t].astype(jnp.float32) + jnp.dot(
            h_s[...].astype(jnp.bfloat16), whh_ref[...],
            preferred_element_type=jnp.float32)
        i = _sigmoid(z[:, 0 * h_pad:1 * h_pad])
        f = _sigmoid(z[:, 1 * h_pad:2 * h_pad])
        g = jnp.tanh(z[:, 2 * h_pad:3 * h_pad])
        o = _sigmoid(z[:, 3 * h_pad:4 * h_pad])
        c = f * c_s[...] + i * g
        h = o * jnp.tanh(c)
        c_s[...] = c
        h_s[...] = h
        out_ref[t] = h.astype(out_ref.dtype)
        return 0

    unroll = t_chunk if t_chunk <= 8 else 4
    lax.fori_loop(0, t_chunk, step, 0, unroll=unroll)


def lstm_recurrence(preact, w_hh):
    """preact: (Tfull, B_pad, 4*H_pad) bf16, w_hh: (H_pad, 4*H_pad) bf16
    -> (Tfull, B_pad, H_pad) bf16."""
    t_full, b_pad, h4 = preact.shape
    h_pad = h4 // 4
    b_tile = _pick_batch_tile(b_pad)
    t_chunk = _pick_time_chunk(t_full, b_tile, h4)
    # TODO(synk): W_hh is grid-invariant; pipeline_mode=pl.Buffered(1) on its
    # BlockSpec would drop the second VMEM copy (minor headroom at large H).
    return pl.pallas_call(
        _lstm_recurrence_kernel,
        out_shape=jax.ShapeDtypeStruct((t_full, b_pad, h_pad), jnp.bfloat16),
        grid_spec=pltpu.PrefetchScalarGridSpec(
            num_scalar_prefetch=0,
            grid=(b_pad // b_tile, t_full // t_chunk),
            in_specs=[
                pl.BlockSpec((t_chunk, b_tile, h4), lambda b, t: (t, b, 0)),
                pl.BlockSpec((h_pad, h4), lambda b, t: (0, 0)),
            ],
            out_specs=pl.BlockSpec((t_chunk, b_tile, h_pad),
                                   lambda b, t: (t, b, 0)),
            scratch_shapes=[
                pltpu.VMEM((b_tile, h_pad), jnp.float32),  # h state
                pltpu.VMEM((b_tile, h_pad), jnp.float32),  # c state
            ],
        ),
        compiler_params=pltpu.CompilerParams(
            dimension_semantics=("parallel", "arbitrary"),
            vmem_limit_bytes=_VMEM_LIMIT),
    )(preact, w_hh)


# ----------------------------------------------------------------------------
# DecoderRNN forward (mirrors the PyTorch module's forward())
# ----------------------------------------------------------------------------
def decoder_rnn_forward(params, features, captions, lengths):
    """features: (B, E) f32; captions: (B, T) int32; lengths: python list,
    sorted descending, each <= T+1.  Returns (sum(lengths), vocab) f32 in
    pack_padded_sequence row order."""
    B, T = captions.shape
    t_full = T + 1
    E = params["embed_size"]
    E_pad, H_pad = params["E_pad"], params["H_pad"]
    V = params["vocab_size"]
    B_pad = _round_up(max(B, 8), 8)

    # Embedding lookup + prepend image features (plain-JAX glue, batch-first).
    emb = jnp.take(params["embed"], captions, axis=0)                  # (B,T,E)
    embeddings = jnp.concatenate([features[:, None, :], emb], axis=1)  # (B,T+1,E)

    # time-major, zero-padded to sublane/lane-dense shapes, bf16 for the MXU.
    x_tm = jnp.transpose(embeddings, (1, 0, 2))                        # (T+1,B,E)
    x_tm = jnp.pad(x_tm, ((0, 0), (0, B_pad - B), (0, E_pad - E)))
    h = x_tm.astype(jnp.bfloat16)                                      # (T+1,Bp,Dp)

    for layer in params["lstm"]:
        d_pad = h.shape[-1]
        # Hoisted input projection for all timesteps at once -> bf16 preacts.
        x_flat = h.reshape(t_full * B_pad, d_pad)
        preact = matmul_bias(x_flat, layer["w_ih"], layer["bias"],
                             out_dtype=jnp.bfloat16)
        preact = preact.reshape(t_full, B_pad, 4 * H_pad)
        # Recurrence (only h @ W_hh per step); bf16 hidden-state output.
        h = lstm_recurrence(preact, layer["w_hh"])                     # (T+1,Bp,Hp)

    # pack_padded_sequence ordering (timestep-major, batch order within step),
    # gathered BEFORE the vocab projection so the big matmul only touches
    # sum(lengths) rows (padded to 16), not (T+1)*B_pad rows.
    # TODO(synk): lengths is a host-side python list; new total-length patterns
    # retrace — a serving variant should keep a static padded row count + mask.
    n_pack = int(sum(lengths))
    n_pack_pad = _round_up(max(n_pack, 16), 16)
    packed_idx = [t * B_pad + b
                  for t in range(max(lengths))
                  for b in range(B) if lengths[b] > t]
    packed_idx = packed_idx + [0] * (n_pack_pad - n_pack)
    packed_idx = jnp.asarray(packed_idx, jnp.int32)

    h_flat = h.reshape(t_full * B_pad, H_pad)            # bf16, no extra cast
    h_packed = jnp.take(h_flat, packed_idx, axis=0)      # (n_pack_pad, H_pad)
    logits = matmul_bias(h_packed, params["linear_wT"], params["linear_b"],
                         out_dtype=jnp.float32)
    return logits[:n_pack, :V]


# ----------------------------------------------------------------------------
# Parameter construction (shapes from DecoderRNN.__init__), gate-fused + padded
# ----------------------------------------------------------------------------
def init_params(key, embed_size, hidden_size, vocab_size, num_layers):
    E_pad = _round_up(embed_size, 128)
    H_pad = _round_up(hidden_size, 128)
    V_pad = _round_up(vocab_size, 128)

    std = 1.0 / math.sqrt(hidden_size)
    ks = jax.random.split(key, 3 + 4 * num_layers)
    it = iter(ks)

    def u(k, shape):
        return jax.random.uniform(k, shape, jnp.float32, -std, std)

    params = {
        "embed_size": embed_size, "hidden_size": hidden_size,
        "vocab_size": vocab_size,
        "E_pad": E_pad, "H_pad": H_pad, "V_pad": V_pad,
        "embed": u(next(it), (vocab_size, embed_size)),
        "lstm": [],
    }

    # NOTE: real nn.LSTM weights are stored (4H, D)/(4H, H) and used as x@W^T;
    # loading them here requires a transpose (gate order i,f,g,o already matches).
    for l in range(num_layers):
        d_in = embed_size if l == 0 else hidden_size
        d_pad = E_pad if l == 0 else H_pad
        w_ih = u(next(it), (4, d_in, hidden_size))        # gate order i,f,g,o
        w_hh = u(next(it), (4, hidden_size, hidden_size))
        b_ih = u(next(it), (4, hidden_size))
        b_hh = u(next(it), (4, hidden_size))

        wih_f = jnp.zeros((d_pad, 4 * H_pad), jnp.float32)
        whh_f = jnp.zeros((H_pad, 4 * H_pad), jnp.float32)
        b_f = jnp.zeros((1, 4 * H_pad), jnp.float32)
        for g in range(4):
            lo = g * H_pad
            wih_f = wih_f.at[:d_in, lo:lo + hidden_size].set(w_ih[g])
            whh_f = whh_f.at[:hidden_size, lo:lo + hidden_size].set(w_hh[g])
            b_f = b_f.at[0, lo:lo + hidden_size].set(b_ih[g] + b_hh[g])

        params["lstm"].append({
            "w_ih": wih_f.astype(jnp.bfloat16),
            "w_hh": whh_f.astype(jnp.bfloat16),
            "bias": b_f,                      # f32, added once in the prologue
        })

    # nn.Linear stores W as (V, H); kernels use W^T = (H_pad, V_pad), zero-padded.
    wT = u(next(it), (hidden_size, vocab_size))
    bb = u(next(it), (vocab_size,))
    params["linear_wT"] = (jnp.zeros((H_pad, V_pad), jnp.float32)
                           .at[:hidden_size, :vocab_size].set(wT)
                           .astype(jnp.bfloat16))
    params["linear_b"] = (jnp.zeros((1, V_pad), jnp.float32)
                          .at[0, :vocab_size].set(bb))
    return params


if __name__ == "__main__":
    embed_size, hidden_size, vocab_size, num_layers = 32, 32, 40, 2
    B, T_cap = 2, 8                       # captions: (B, T_cap)
    lengths = [9, 6]                      # sorted descending, <= T_cap + 1

    key = jax.random.PRNGKey(0)
    k_par, k_feat, k_cap = jax.random.split(key, 3)

    params = init_params(k_par, embed_size, hidden_size, vocab_size, num_layers)
    features = jax.random.normal(k_feat, (B, embed_size), jnp.float32)
    captions = jax.random.randint(k_cap, (B, T_cap), 0, vocab_size, jnp.int32)

    out = decoder_rnn_forward(params, features, captions, lengths)
    out = jax.block_until_ready(out)

    expected_rows = sum(lengths)
    assert out.shape == (expected_rows, vocab_size), out.shape
    assert bool(jnp.all(jnp.isfinite(out)))
    print("KERNEL_OK")
</pallas_src>

<mosaic_0001>
module attributes {stable_mosaic.version = 11 : i64} {
  func.func @_matmul_bias_kernel(%arg0: i32, %arg1: i32, %arg2: memref<72x128xbf16, #tpu.memory_space<vmem>>, %arg3: memref<128x512xbf16, #tpu.memory_space<vmem>>, %arg4: memref<1x512xf32, #tpu.memory_space<vmem>>, %arg5: memref<72x512xbf16, #tpu.memory_space<vmem>>) attributes {dimension_semantics = [#tpu.dimension_semantics<parallel>, #tpu.dimension_semantics<parallel>], iteration_bounds = array<i64: 1, 1>, scalar_prefetch = 0 : i64, scratch_operands = 0 : i64, tpu.core_type = #tpu.core_type<tc>, window_params = [{transform_indices = @transform_0, window_bounds = array<i64: 72, 128>}, {transform_indices = @transform_1, window_bounds = array<i64: 128, 512>}, {transform_indices = @transform_2, window_bounds = array<i64: 1, 512>}, {transform_indices = @transform_3, window_bounds = array<i64: 72, 512>}]} {
    %c0 = arith.constant 0 : index
    %c0_0 = arith.constant 0 : index
    %0 = vector.load %arg2[%c0, %c0_0] : memref<72x128xbf16, #tpu.memory_space<vmem>>, vector<72x128xbf16>
    %c0_1 = arith.constant 0 : index
    %c0_2 = arith.constant 0 : index
    %1 = vector.load %arg3[%c0_1, %c0_2] : memref<128x512xbf16, #tpu.memory_space<vmem>>, vector<128x512xbf16>
    %cst = arith.constant dense<0.000000e+00> : vector<72x512xf32>
    %2 = tpu.matmul %0, %1, %cst {dimension_numbers = #tpu.dot_dimension_numbers<[1], [0], [0], [1], [0, 0, 1, 1], [], []>} : vector<72x128xbf16>, vector<128x512xbf16>, vector<72x512xf32> -> vector<72x512xf32>
    %c0_3 = arith.constant 0 : index
    %c0_4 = arith.constant 0 : index
    %3 = vector.load %arg4[%c0_3, %c0_4] : memref<1x512xf32, #tpu.memory_space<vmem>>, vector<1x512xf32>
    %4 = vector.broadcast %3 : vector<1x512xf32> to vector<72x512xf32>
    %5 = arith.addf %2, %4 : vector<72x512xf32>
    %6 = arith.truncf %5 : vector<72x512xf32> to vector<72x512xbf16>
    %c0_5 = arith.constant 0 : index
    %c0_6 = arith.constant 0 : index
    %7 = vector.load %arg5[%c0_5, %c0_6] : memref<72x512xbf16, #tpu.memory_space<vmem>>, vector<72x512xbf16>
    tpu.vector_store %arg5[%c0_5, %c0_6], %6 {strides = array<i32>} : memref<72x512xbf16, #tpu.memory_space<vmem>>, vector<72x512xbf16>,
    return
  }
  func.func @transform_0(%arg0: i32, %arg1: i32) -> (i32, i32) {
    %c0_i32 = arith.constant 0 : i32
    %c0_i32_0 = arith.constant 0 : i32
    return %arg0, %c0_i32 : i32, i32
  }
  func.func @transform_1(%arg0: i32, %arg1: i32) -> (i32, i32) {
    %c0_i32 = arith.constant 0 : i32
    %c0_i32_0 = arith.constant 0 : i32
    return %c0_i32, %arg1 : i32, i32
  }
  func.func @transform_2(%arg0: i32, %arg1: i32) -> (i32, i32) {
    %c0_i32 = arith.constant 0 : i32
    %c0_i32_0 = arith.constant 0 : i32
    return %c0_i32, %arg1 : i32, i32
  }
  func.func @transform_3(%arg0: i32, %arg1: i32) -> (i32, i32) {
    %c0_i32 = arith.constant 0 : i32
    return %arg0, %arg1 : i32, i32
  }
}

</mosaic_0001>

<bundles_post_ra>
// kernel: tpu_custom_call.1
= control target key start
LH: loop header
LB: loop body
LE: loop exit
PB: predicated region body
PF: predicated region fallthrough
CT: control target
= control target key end

     0   :  { %8 = vsyncpa [#allocation3], 0  ;;  %s938_s0 = inlined_call_operand.hbm [shape: bf16[72,128], index: 0, kind: input, shape index: {}]   ;;  %s939_s1 = inlined_call_operand.hbm [shape: bf16[128,512], index: 1, kind: input, shape index: {}]   ;;  %s940_s2 = inlined_call_operand.vmem [shape: f32[1,512], index: 2, kind: input, shape index: {}]   ;;  %s941_s3 = inlined_call_operand.hbm [shape: bf16[72,512], index: 3, kind: output, shape index: {}]  }
   0x1   :  { %9 = vsyncpa [#allocation6], 0 }
   0x2   :  { %10 = vsyncpa [#allocation4], 0  ;;  %s811_s12 = smov [#allocation2]   ;;  %s739_s16 = scalar_lea.hbm %s938_s0, 576 }
   0x3   :  { %s16_s13 = sshll.u32 %s811_s12, 4  ;;  %p740_p0 = scmp.ne.s32.totalorder %s938_s0, %s739_s16  ;;  %s17_s13 = int_to_ptr.vmem [resolvable:$true] %s16_s13 }
   0x4   :  { %p743_p1 = scmp.lt.u32.totalorder %s739_s16, %s938_s0 }
   0x6   :  { %p745_p2 = pnand %p743_p1, %p740_p0 }
   0x8   :  { %748 = shalt.err (!%p745_p2)
}
   0x9   :  { %s749_s21 = scalar_lea.vmem %s17_s13, 576  ;;  %p754_p4 = scmp.lt.s32.totalorder %s17_s13, %s17_s13 }
   0xa   :  { %p750_p3 = scmp.ne.s32.totalorder %s17_s13, %s749_s21  ;;  %p755_p5 = scmp.lt.s32.totalorder %s749_s21, %s749_s21 }
   0xc   :  { %p756_p6 = por %p755_p5, %p754_p4 }
   0xe   :  { %p757_p7 = pnand %p756_p6, %p750_p3 }
  0x10   :  { %760 = shalt.err (!%p757_p7)
}
  0x11   :  { %s812_s22 = smov 64   ;;  %s813_s23 = smov 4  }
  0x12   :  { %22 = dma.hbm_to_vmem [thread:$0]  %s938_s0, 576, %s17_s13, [#allocation3], %s812_s22, %s812_s22, %s813_s23  }
  0x13   :  { %s814_s26 = smov [#allocation5]   ;;  %s761_s30 = scalar_lea.hbm %s939_s1, 4096 }
  0x14   :  { %s28_s27 = sshll.u32 %s814_s26, 4  ;;  %p762_p8 = scmp.ne.s32.totalorder %s939_s1, %s761_s30  ;;  %s29_s27 = int_to_ptr.vmem [resolvable:$true] %s28_s27 }
  0x15   :  { %p765_p9 = scmp.lt.u32.totalorder %s761_s30, %s939_s1 }
  0x17   :  { %p767_p10 = pnand %p765_p9, %p762_p8 }
  0x19   :  { %770 = shalt.err (!%p767_p10)
}
  0x1a   :  { %s771_s8 = scalar_lea.vmem %s29_s27, 4096  ;;  %p776_p12 = scmp.lt.s32.totalorder %s29_s27, %s29_s27 }
  0x1b   :  { %p772_p11 = scmp.ne.s32.totalorder %s29_s27, %s771_s8  ;;  %p777_p13 = scmp.lt.s32.totalorder %s771_s8, %s771_s8 }
  0x1d   :  { %p778_p0 = por %p777_p13, %p776_p12 }
  0x1f   :  { %p779_p1 = pnand %p778_p0, %p772_p11 }
  0x21   :  { %782 = shalt.err (!%p779_p1)
}
  0x22   :  { %s815_s0 = smov 256   ;;  %s816_s9 = smov 16  }
  0x23   :  { %34 = dma.hbm_to_vmem [thread:$0]  %s939_s1, 4096, %s29_s27, [#allocation6], %s815_s0, %s815_s0, %s816_s9  }
  0x24   :  { %805 = dma.done.wait [#allocation3], 576  }
  0x25   :  { %806 = vsyncadd [#allocation3], 4294966720 }
  0x26   :  { %807 = dma.done.wait [#allocation6], 4096  }
  0x27   :  { %808 = vsyncadd [#allocation6], 4294963200  ;;  %v817_v0 = vmov 0   ;;  %v686_v1 = vld [vmem:[#allocation5 + $0x4] ss:$16 sps:$4 sm:$0xff]   ;;  %v734_v33 = vld [vmem:[#allocation2] sm:$0xff]   ;;  %v87_v38 = vlaneseq }
  0x28   :  { %327 = vmatprep.mubr.bf16.mxu0 %v817_v0  ;;  %408 = vmatprep.mubr.bf16.mxu1 %v817_v0  ;;  %v688_v2 = vld [vmem:[#allocation5 + $0xc] ss:$16 sps:$4 sm:$0xff]   ;;  %v690_v3 = vld [vmem:[#allocation5] ss:$16 sps:$4 sm:$0xff]   ;;  %v691_v4 = vld [vmem:[#allocation5 + $0x8] ss:$16 sps:$4 sm:$0xff]  }
  0x29   :  { %295 = vmatprep.subr.bf16.mxu0 %v686_v1  ;;  %376 = vmatprep.subr.bf16.mxu1 %v688_v2  ;;  %v692_v5 = vld [vmem:[#allocation5 + $0x24] ss:$16 sps:$4 sm:$0xff]   ;;  %v694_v6 = vld [vmem:[#allocation5 + $0x2c] ss:$16 sps:$4 sm:$0xff]   ;;  %v696_v7 = vld [vmem:[#allocation5 + $0x20] ss:$16 sps:$4 sm:$0xff]  }
  0x2a   :  { %296 = vmatpush1.bf16.msra.mxu0 %v690_v3  ;;  %377 = vmatpush1.bf16.msra.mxu1 %v691_v4  ;;  %v697_v8 = vld [vmem:[#allocation5 + $0x28] ss:$16 sps:$4 sm:$0xff]   ;;  %v698_v9 = vld [vmem:[#allocation5 + $0x44] ss:$16 sps:$4 sm:$0xff]   ;;  %v700_v10 = vld [vmem:[#allocation5 + $0x4c] ss:$16 sps:$4 sm:$0xff]  }
  0x2b   :  { %297 = vmatprep.subr.bf16.mxu0 %v692_v5  ;;  %378 = vmatprep.subr.bf16.mxu1 %v694_v6  ;;  %v702_v11 = vld [vmem:[#allocation5 + $0x40] ss:$16 sps:$4 sm:$0xff]   ;;  %v703_v12 = vld [vmem:[#allocation5 + $0x48] ss:$16 sps:$4 sm:$0xff]   ;;  %v704_v13 = vld [vmem:[#allocation5 + $0x64] ss:$16 sps:$4 sm:$0xff]  }
  0x2c   :  { %v706_v14 = vld [vmem:[#allocation5 + $0x6c] ss:$16 sps:$4 sm:$0xff]   ;;  %v708_v15 = vld [vmem:[#allocation5 + $0x60] ss:$16 sps:$4 sm:$0xff]   ;;  %v709_v16 = vld [vmem:[#allocation5 + $0x68] ss:$16 sps:$4 sm:$0xff]  }
  0x2d   :  { %v710_v17 = vld [vmem:[#allocation5 + $0x84] ss:$16 sps:$4 sm:$0xff]   ;;  %v712_v18 = vld [vmem:[#allocation5 + $0x8c] ss:$16 sps:$4 sm:$0xff]   ;;  %v714_v19 = vld [vmem:[#allocation5 + $0x80] ss:$16 sps:$4 sm:$0xff]  }
  0x2e   :  { %298 = vmatpush1.bf16.msra.mxu0 %v696_v7  ;;  %379 = vmatpush1.bf16.msra.mxu1 %v697_v8  ;;  %v715_v20 = vld [vmem:[#allocation5 + $0x88] ss:$16 sps:$4 sm:$0xff]   ;;  %v716_v21 = vld [vmem:[#allocation5 + $0xa4] ss:$16 sps:$4 sm:$0xff]   ;;  %v718_v22 = vld [vmem:[#allocation5 + $0xac] ss:$16 sps:$4 sm:$0xff]  }
  0x2f   :  { %299 = vmatprep.subr.bf16.mxu0 %v698_v9  ;;  %380 = vmatprep.subr.bf16.mxu1 %v700_v10  ;;  %v720_v23 = vld [vmem:[#allocation5 + $0xa0] ss:$16 sps:$4 sm:$0xff]   ;;  %v721_v24 = vld [vmem:[#allocation5 + $0xa8] ss:$16 sps:$4 sm:$0xff]   ;;  %v722_v25 = vld [vmem:[#allocation5 + $0xc4] ss:$16 sps:$4 sm:$0xff]  }
  0x30   :  { %v724_v26 = vld [vmem:[#allocation5 + $0xcc] ss:$16 sps:$4 sm:$0xff]   ;;  %v726_v27 = vld [vmem:[#allocation5 + $0xc0] ss:$16 sps:$4 sm:$0xff]   ;;  %v727_v28 = vld [vmem:[#allocation5 + $0xc8] ss:$16 sps:$4 sm:$0xff]  }
  0x31   :  { %v728_v29 = vld [vmem:[#allocation5 + $0xe4] ss:$16 sps:$4 sm:$0xff]   ;;  %v730_v30 = vld [vmem:[#allocation5 + $0xec] ss:$16 sps:$4 sm:$0xff]   ;;  %v732_v31 = vld [vmem:[#allocation5 + $0xe0] ss:$16 sps:$4 sm:$0xff]  }
  0x32   :  { %300 = vmatpush1.bf16.msra.mxu0 %v702_v11  ;;  %381 = vmatpush1.bf16.msra.mxu1 %v703_v12  ;;  %v733_v32 = vld [vmem:[#allocation5 + $0xe8] ss:$16 sps:$4 sm:$0xff]   ;;  %v736_v35 = vld [vmem:[#allocation2 + $0x10] sm:$0xff]   ;;  %v738_v37 = vld [vmem:[#allocation2 + $0x20] ss:$0 sps:$4 sm:$0xff]   ;;  %v88_v39 = vshrl.u32 %v87_v38, 7 }
  0x33   :  { %301 = vmatprep.subr.bf16.mxu0 %v704_v13  ;;  %382 = vmatprep.subr.bf16.mxu1 %v706_v14  ;;  %v735_v34 = vld [vmem:[#allocation2 + $0x8] sm:$0xff]   ;;  %v737_v36 = vld [vmem:[#allocation2 + $0x18] sm:$0xff]   ;;  %v85_v42 = vld [vmem:[%s940_s2] sm:$0xf]  ;;  %s818_s2 = smov [#allocation7]  }
  0x34   :  { %v89_v40 = vsub.s32 0, %v88_v39  ;;  %v97_v41 = vsub.s32 2, %v88_v39  ;;  %v93_v43 = vsub.s32 1, %v88_v39  ;;  %v101_v44 = vsub.s32 3, %v88_v39  ;;  %s592_s13 = sshll.u32 %s818_s2, 4  ;;  %s593_s13 = int_to_ptr.vmem [resolvable:$true] %s592_s13 }
  0x35   :  { %s783_s14 = scalar_lea.vmem %s593_s13, 2304  ;;  %p788_p3 = scmp.lt.s32.totalorder %s593_s13, %s593_s13 }
  0x36   :  { %302 = vmatpush1.bf16.msra.mxu0 %v708_v15  ;;  %383 = vmatpush1.bf16.msra.mxu1 %v709_v16  ;;  %v879_v45 = vrot.slane %v85_v42, %v89_v40  ;;  %v881_v46 = vrot.slane %v85_v42, %v97_v41  ;;  %v883_v47 = vrot.slane %v85_v42, %v93_v43  ;;  %p784_p2 = scmp.ne.s32.totalorder %s593_s13, %s783_s14  ;;  %p789_p4 = scmp.lt.s32.totalorder %s783_s14, %s783_s14 }
  0x37   :  { %303 = vmatprep.subr.bf16.mxu0 %v710_v17  ;;  %384 = vmatprep.subr.bf16.mxu1 %v712_v18  ;;  %v885_v48 = vrot.slane %v85_v42, %v101_v44 }
  0x38   :  { %p790_p5 = por %p789_p4, %p788_p3 }
  0x3a   :  { %304 = vmatpush1.bf16.msra.mxu0 %v714_v19  ;;  %385 = vmatpush1.bf16.msra.mxu1 %v715_v20  ;;  %p791_p6 = pnand %p790_p5, %p784_p2 }
  0x3b   :  { %305 = vmatprep.subr.bf16.mxu0 %v716_v21  ;;  %386 = vmatprep.subr.bf16.mxu1 %v718_v22 }
  0x3e   :  { %306 = vmatpush1.bf16.msra.mxu0 %v720_v23  ;;  %387 = vmatpush1.bf16.msra.mxu1 %v721_v24 }
  0x3f   :  { %307 = vmatprep.subr.bf16.mxu0 %v722_v25  ;;  %388 = vmatprep.subr.bf16.mxu1 %v724_v26 }
  0x42   :  { %308 = vmatpush1.bf16.msra.mxu0 %v726_v27  ;;  %389 = vmatpush1.bf16.msra.mxu1 %v727_v28 }
  0x43   :  { %309 = vmatprep.subr.bf16.mxu0 %v728_v29  ;;  %390 = vmatprep.subr.bf16.mxu1 %v730_v30 }
  0x46   :  { %310 = vmatpush1.bf16.msra.mxu0 %v732_v31  ;;  %391 = vmatpush1.bf16.msra.mxu1 %v733_v32 }
  0x49   :  { %328 = vmatmul.mubr.bf16.vlgmr.msra.gmra.mrb[0].mxu0 %v734_v33  ;;  %409 = vmatmul.mubr.bf16.vlgmr.msra.gmra.mrb[0].mxu1 %v734_v33 }
  0x4a   :  { %337 = vmatprep.mubr.bf16.mxu0 %v817_v0  ;;  %418 = vmatprep.mubr.bf16.mxu1 %v817_v0 }
  0x51   :  { %338 = vmatmul.mubr.bf16.gmra.mrb[4].mxu0 %v735_v34  ;;  %419 = vmatmul.mubr.bf16.gmra.mrb[4].mxu1 %v735_v34 }
  0x52   :  { %347 = vmatprep.mubr.bf16.mxu0 %v817_v0  ;;  %428 = vmatprep.mubr.bf16.mxu1 %v817_v0 }
  0x59   :  { %348 = vmatmul.mubr.bf16.gmra.mrb[8].mxu0 %v736_v35  ;;  %429 = vmatmul.mubr.bf16.gmra.mrb[8].mxu1 %v736_v35 }
  0x5a   :  { %357 = vmatprep.mubr.bf16.mxu0 %v817_v0  ;;  %438 = vmatprep.mubr.bf16.mxu1 %v817_v0 }
  0x61   :  { %358 = vmatmul.mubr.bf16.gmra.mrb[12].mxu0 %v737_v36  ;;  %439 = vmatmul.mubr.bf16.gmra.mrb[12].mxu1 %v737_v36 }
  0x62   :  { %367 = vmatprep.mubr.bf16.mxu0 %v817_v0  ;;  %448 = vmatprep.mubr.bf16.mxu1 %v817_v0 }
  0x69   :  { %368 = vmatmul.mubr.bf16.gmra.mrb[16].mxu0 %v738_v37  ;;  %449 = vmatmul.mubr.bf16.gmra.mrb[16].mxu1 %v738_v37 }
 0x11c   :  { %v329_v49 = vpop.f32.mrb[0].mxu0  ;;  %v410_v50 = vpop.f32.mrb[0].mxu1 }
 0x11d   :  { %v330_v51 = vadd.f32 %v329_v49, %v879_v45  ;;  %v411_v52 = vadd.f32 %v410_v50, %v881_v46  ;;  %v331_v53 = vpop.f32.mrb[1].mxu0  ;;  %v412_v54 = vpop.f32.mrb[1].mxu1 }
 0x11e   :  { %v332_v55 = vadd.f32 %v331_v53, %v883_v47  ;;  %v413_v56 = vadd.f32 %v412_v54, %v885_v48  ;;  %v333_v57 = vpop.f32.mrb[2].mxu0  ;;  %v414_v58 = vpop.f32.mrb[2].mxu1 }
 0x11f   :  { %v334_v59 = vadd.f32 %v333_v57, %v879_v45  ;;  %v415_v60 = vadd.f32 %v414_v58, %v881_v46  ;;  %v335_v61 = vpop.f32.mrb[3].mxu0  ;;  %v416_v62 = vpop.f32.mrb[3].mxu1 }
 0x120   :  { %v660_v63 = vpack.c.bf16 %v332_v55, %v330_v51  ;;  %v661_v0 = vpack.c.bf16 %v413_v56, %v411_v52  ;;  %v336_v1 = vadd.f32 %v335_v61, %v883_v47  ;;  %v417_v2 = vadd.f32 %v416_v62, %v885_v48 }
 0x122   :  { %569 = vst [vmem:[#allocation7] sm:$0xff] %v660_v63  ;;  %570 = vst [vmem:[#allocation7 + $0x8] sm:$0xff] %v661_v0  ;;  %v662_v3 = vpack.c.bf16 %v336_v1, %v334_v59  ;;  %v663_v4 = vpack.c.bf16 %v417_v2, %v415_v60 }
 0x124   :  { %571 = vst [vmem:[#allocation7 + $0x10] sm:$0xff] %v662_v3  ;;  %572 = vst [vmem:[#allocation7 + $0x18] sm:$0xff] %v663_v4  ;;  %v339_v5 = vpop.f32.mrb[4].mxu0  ;;  %v420_v6 = vpop.f32.mrb[4].mxu1 }
 0x125   :  { %v340_v7 = vadd.f32 %v339_v5, %v879_v45  ;;  %v421_v8 = vadd.f32 %v420_v6, %v881_v46  ;;  %v341_v9 = vpop.f32.mrb[5].mxu0  ;;  %v422_v10 = vpop.f32.mrb[5].mxu1 }
 0x126   :  { %v342_v11 = vadd.f32 %v341_v9, %v883_v47  ;;  %v423_v12 = vadd.f32 %v422_v10, %v885_v48  ;;  %v343_v13 = vpop.f32.mrb[6].mxu0  ;;  %v424_v14 = vpop.f32.mrb[6].mxu1 }
 0x127   :  { %v344_v15 = vadd.f32 %v343_v13, %v879_v45  ;;  %v425_v16 = vadd.f32 %v424_v14, %v881_v46  ;;  %v345_v17 = vpop.f32.mrb[7].mxu0  ;;  %v426_v18 = vpop.f32.mrb[7].mxu1 }
 0x128   :  { %v664_v19 = vpack.c.bf16 %v342_v11, %v340_v7  ;;  %v665_v20 = vpack.c.bf16 %v423_v12, %v421_v8  ;;  %v346_v21 = vadd.f32 %v345_v17, %v883_v47  ;;  %v427_v22 = vadd.f32 %v426_v18, %v885_v48 }
 0x12a   :  { %573 = vst [vmem:[#allocation7 + $0x20] sm:$0xff] %v664_v19  ;;  %574 = vst [vmem:[#allocation7 + $0x28] sm:$0xff] %v665_v20  ;;  %v666_v23 = vpack.c.bf16 %v346_v21, %v344_v15  ;;  %v667_v24 = vpack.c.bf16 %v427_v22, %v425_v16 }
 0x12c   :  { %575 = vst [vmem:[#allocation7 + $0x30] sm:$0xff] %v666_v23  ;;  %576 = vst [vmem:[#allocation7 + $0x38] sm:$0xff] %v667_v24  ;;  %v349_v25 = vpop.f32.mrb[8].mxu0  ;;  %v430_v26 = vpop.f32.mrb[8].mxu1 }
 0x12d   :  { %v350_v27 = vadd.f32 %v349_v25, %v879_v45  ;;  %v431_v28 = vadd.f32 %v430_v26, %v881_v46  ;;  %v351_v29 = vpop.f32.mrb[9].mxu0  ;;  %v432_v30 = vpop.f32.mrb[9].mxu1 }
 0x12e   :  { %v352_v31 = vadd.f32 %v351_v29, %v883_v47  ;;  %v433_v32 = vadd.f32 %v432_v30, %v885_v48  ;;  %v353_v33 = vpop.f32.mrb[10].mxu0  ;;  %v434_v34 = vpop.f32.mrb[10].mxu1 }
 0x12f   :  { %v354_v35 = vadd.f32 %v353_v33, %v879_v45  ;;  %v435_v36 = vadd.f32 %v434_v34, %v881_v46  ;;  %v355_v37 = vpop.f32.mrb[11].mxu0  ;;  %v436_v38 = vpop.f32.mrb[11].mxu1 }
 0x130   :  { %v668_v39 = vpack.c.bf16 %v352_v31, %v350_v27  ;;  %v669_v40 = vpack.c.bf16 %v433_v32, %v431_v28  ;;  %v356_v41 = vadd.f32 %v355_v37, %v883_v47  ;;  %v437_v42 = vadd.f32 %v436_v38, %v885_v48 }
 0x132   :  { %577 = vst [vmem:[#allocation7 + $0x40] sm:$0xff] %v668_v39  ;;  %578 = vst [vmem:[#allocation7 + $0x48] sm:$0xff] %v669_v40  ;;  %v670_v43 = vpack.c.bf16 %v356_v41, %v354_v35  ;;  %v671_v44 = vpack.c.bf16 %v437_v42, %v435_v36 }
 0x134   :  { %579 = vst [vmem:[#allocation7 + $0x50] sm:$0xff] %v670_v43  ;;  %580 = vst [vmem:[#allocation7 + $0x58] sm:$0xff] %v671_v44  ;;  %v359_v49 = vpop.f32.mrb[12].mxu0  ;;  %v440_v50 = vpop.f32.mrb[12].mxu1 }
 0x135   :  { %v360_v51 = vadd.f32 %v359_v49, %v879_v45  ;;  %v441_v52 = vadd.f32 %v440_v50, %v881_v46  ;;  %v361_v53 = vpop.f32.mrb[13].mxu0  ;;  %v442_v54 = vpop.f32.mrb[13].mxu1 }
 0x136   :  { %v362_v55 = vadd.f32 %v361_v53, %v883_v47  ;;  %v443_v56 = vadd.f32 %v442_v54, %v885_v48  ;;  %v363_v57 = vpop.f32.mrb[14].mxu0  ;;  %v444_v58 = vpop.f32.mrb[14].mxu1 }
 0x137   :  { %v364_v59 = vadd.f32 %v363_v57, %v879_v45  ;;  %v445_v60 = vadd.f32 %v444_v58, %v881_v46  ;;  %v365_v61 = vpop.f32.mrb[15].mxu0  ;;  %v446_v62 = vpop.f32.mrb[15].mxu1 }
 0x138   :  { %v672_v63 = vpack.c.bf16 %v362_v55, %v360_v51  ;;  %v673_v0 = vpack.c.bf16 %v443_v56, %v441_v52  ;;  %v366_v1 = vadd.f32 %v365_v61, %v883_v47  ;;  %v447_v2 = vadd.f32 %v446_v62, %v885_v48 }
 0x13a   :  { %581 = vst [vmem:[#allocation7 + $0x60] sm:$0xff] %v672_v63  ;;  %582 = vst [vmem:[#allocation7 + $0x68] sm:$0xff] %v673_v0  ;;  %v674_v3 = vpack.c.bf16 %v366_v1, %v364_v59  ;;  %v675_v4 = vpack.c.bf16 %v447_v2, %v445_v60 }
 0x13c   :  { %583 = vst [vmem:[#allocation7 + $0x70] sm:$0xff] %v674_v3  ;;  %584 = vst [vmem:[#allocation7 + $0x78] sm:$0xff] %v675_v4  ;;  %v369_v5 = vpop.f32.mrb[16].mxu0  ;;  %v450_v6 = vpop.f32.mrb[16].mxu1 }
 0x13d   :  { %v370_v7 = vadd.f32 %v369_v5, %v879_v45  ;;  %v451_v8 = vadd.f32 %v450_v6, %v881_v46  ;;  %v371_v9 = vpop.f32.mrb[17].mxu0  ;;  %v452_v10 = vpop.f32.mrb[17].mxu1 }
 0x13e   :  { %v372_v11 = vadd.f32 %v371_v9, %v883_v47  ;;  %v453_v12 = vadd.f32 %v452_v10, %v885_v48  ;;  %v373_v13 = vpop.f32.mrb[18].mxu0  ;;  %v454_v14 = vpop.f32.mrb[18].mxu1 }
 0x13f   :  { %v374_v15 = vpop.f32.mrb[19].mxu0  ;;  %v455_v16 = vpop.f32.mrb[19].mxu1 }
 0x140   :  { %v676_v17 = vpack.c.bf16 %v372_v11, %v370_v7  ;;  %v677_v18 = vpack.c.bf16 %v453_v12, %v451_v8 }
 0x142   :  { %585 = vst [vmem:[#allocation7 + $0x80] sm:$0xff] %v676_v17  ;;  %586 = vst [vmem:[#allocation7 + $0x88] sm:$0xff] %v677_v18 }
 0x143   :  { %794 = shalt.err (!%p791_p6)
}
 0x144   :  { %s795_s17 = scalar_lea.hbm %s941_s3, 2304 }
 0x145   :  { %p796_p7 = scmp.ne.s32.totalorder %s941_s3, %s795_s17  ;;  %p799_p8 = scmp.lt.u32.totalorder %s795_s17, %s941_s3 }
 0x147   :  { %p801_p9 = pnand %p799_p8, %p796_p7 }
 0x149   :  { %804 = shalt.err (!%p801_p9)
}
 0x14a   :  { %598 = dma.vmem_to_hbm [thread:$0]  %s593_s13, 2304, %s941_s3, [#allocation4], %s815_s0, %s815_s0, %s816_s9  }
 0x14b   :  { %809 = dma.done.wait [#allocation4], 2304  }
 0x14c   :  { %810 = vsyncadd [#allocation4], 4294964992 }
 0x14d   :  { %602 = vsyncpa [#allocation3], 1 }
 0x14e   :  { %603 = vsyncpa [#allocation6], 1 }
 0x14f   :  { %604 = vsyncpa [#allocation4], 1 }

</bundles_post_ra>
